<compile_context>
chip_gen: v7x
topology: tpu7x:2x2x1
jax: 0.10.0
libtpu: 0.0.40
codegen_flags: <defaults>
</compile_context>

<pallas_src>
import functools

import jax
import jax.numpy as jnp
from jax.experimental import pallas as pl
from jax.experimental.pallas import tpu as pltpu


def _round_up(x, m):
    return (x + m - 1) // m * m


def _sublane_mult(*dtypes):
    # bf16 packs two rows per 32-bit sublane: keep sublane extents a multiple of
    # 16 when bf16 is involved so tiles never need masked/relayout sublane handling.
    return 16 if any(jnp.dtype(d) == jnp.dtype(jnp.bfloat16) for d in dtypes) else 8


def _focus_kernel(x_ref, w_ref, b_ref, o_ref):
    # x_ref: (K_p, TM)   space-to-depth input tile, channel-major, spatial on lanes
    # w_ref: (C2_p, K_p) BN-scale-folded 1x1 conv weight (resident, constant index_map)
    # b_ref: (C2_p, 1)   folded BN bias (f32), broadcast over lanes
    # o_ref: (C2_p, TM)  output tile, already in NCHW layout (C on sublanes, spatial on lanes)
    y = jnp.dot(w_ref[...], x_ref[...], preferred_element_type=jnp.float32)
    y = y + b_ref[...]
    # SiLU(y) = y * sigmoid(y), sigmoid(y) = 0.5*tanh(0.5*y) + 0.5:
    #  - one EUP push per vreg (vs exp + reciprocal),
    #  - bounded (no exp overflow), accurate enough for f32 parity.
    o_ref[...] = (y * (0.5 * jnp.tanh(0.5 * y) + 0.5)).astype(o_ref.dtype)


def focus_forward(x_nchw, w_oi, gamma, beta, run_mean, run_var, eps=1e-5,
                  tm=16384, compute_dtype=jnp.bfloat16, out_dtype=jnp.bfloat16,
                  vmem_budget_bytes=20 * 1024 * 1024):
    """Focus.forward for k=1, s=1, g=1, act=SiLU (BatchNorm in eval semantics).

    x_nchw : (B, C1, H, W) float32, H and W even
    w_oi   : (C2, 4*C1)    1x1 conv weight (squeezed from (C2, 4*C1, 1, 1))
    gamma, beta, run_mean, run_var : (C2,) BatchNorm2d parameters / running stats
    returns: (B, C2, H//2, W//2) in out_dtype (NCHW, matching PyTorch layout)

    Default compute_dtype / out_dtype are bf16 (HBM-bound op); pass float32 for
    both to get bit-close parity with the PyTorch f32 forward.
    """
    B, C1, H, W = x_nchw.shape
    assert H % 2 == 0 and W % 2 == 0, "Focus requires even spatial dims"
    C2 = w_oi.shape[0]
    K = 4 * C1
    H2, W2 = H // 2, W // 2
    M = H2 * W2

    K_p = _round_up(K, _sublane_mult(compute_dtype))
    C2_p = _round_up(C2, _sublane_mult(compute_dtype, out_dtype))

    cd_bytes = jnp.dtype(compute_dtype).itemsize
    ob_bytes = jnp.dtype(out_dtype).itemsize

    # --- spatial tile selection -------------------------------------------------
    # Pad M only to the mandatory 128-lane granule; pick the tile as a divisor of
    # that (no wasted lanes), capped by the requested tm and by a double-buffered
    # VMEM budget (x tile + out tile, 2 buffers each).
    units = _round_up(M, 128) // 128
    per_unit_bytes = 2 * 128 * (K_p * cd_bytes + C2_p * ob_bytes)
    cap_units = max(1, min(max(tm // 128, 1),
                           max(vmem_budget_bytes // per_unit_bytes, 1),
                           units))
    n_blocks = -(-units // cap_units)           # ceil
    while units % n_blocks:
        n_blocks += 1                           # terminates at n_blocks == units
    tm_eff = (units // n_blocks) * 128          # lane-dense, divides M_p exactly
    M_p = units * 128

    # --- fused space-to-depth (single XLA pass) ----------------------------------
    # Cast the strided slices to the compute dtype BEFORE the concat, fold the
    # channel padding into the concat, and apply the spatial pad on the same value.
    cd = compute_dtype
    parts = [x_nchw[:, :, ::2, ::2].astype(cd),
             x_nchw[:, :, 1::2, ::2].astype(cd),
             x_nchw[:, :, ::2, 1::2].astype(cd),
             x_nchw[:, :, 1::2, 1::2].astype(cd)]
    if K_p != K:
        parts.append(jnp.zeros((B, K_p - K, H2, W2), cd))
    x_km = jnp.concatenate(parts, axis=1).reshape(B, K_p, M)   # (B, K_p, M) channel-major
    if M_p != M:
        x_km = jax.lax.pad(x_km, jnp.zeros((), cd),
                           [(0, 0, 0), (0, 0, 0), (0, M_p - M, 0)])

    # --- fold BN (eval) into conv weight + per-channel bias ----------------------
    scale = gamma / jnp.sqrt(run_var + eps)                     # (C2,)
    bias = beta - run_mean * scale                              # (C2,)
    w_scaled = (w_oi.astype(jnp.float32) * scale[:, None])      # (C2, K) f32 fold
    if C2_p != C2 or K_p != K:
        w_scaled = jnp.pad(w_scaled, ((0, C2_p - C2), (0, K_p - K)))
        bias = jnp.pad(bias, (0, C2_p - C2))
    w_scaled = w_scaled.astype(cd)                              # streamed in compute dtype
    bias2 = bias.reshape(C2_p, 1).astype(jnp.float32)

    grid = (B, M_p // tm_eff)

    out = pl.pallas_call(
        _focus_kernel,
        out_shape=jax.ShapeDtypeStruct((B, C2_p, M_p), out_dtype),
        grid_spec=pltpu.PrefetchScalarGridSpec(
            num_scalar_prefetch=0,
            grid=grid,
            in_specs=[
                pl.BlockSpec((None, K_p, tm_eff), lambda bi, mi: (bi, 0, mi)),  # x tile
                pl.BlockSpec((C2_p, K_p), lambda bi, mi: (0, 0)),               # weight (resident)
                pl.BlockSpec((C2_p, 1), lambda bi, mi: (0, 0)),                 # bias (resident)
            ],
            out_specs=pl.BlockSpec((None, C2_p, tm_eff), lambda bi, mi: (bi, 0, mi)),
        ),
        compiler_params=pltpu.CompilerParams(
            # Both axes independent; the long spatial-tile axis load-balances the
            # two v7x TensorCores even when B is 1 or odd.
            dimension_semantics=("parallel", "parallel"),
            # Covers the v5e 16 MiB scoped default; still <= v6e/v7x defaults.
            vmem_limit_bytes=32 * 1024 * 1024,
        ),
    )(x_km, w_scaled, bias2)

    # (B, C2_p, M_p) -> slice off padding -> NCHW output.
    return out[:, :C2, :M].reshape(B, C2, H2, W2)


def _reference(x, w, gamma, beta, mean, var, eps=1e-5):
    """Pure-JAX f32 reference of Focus.forward (eval BN)."""
    a = x[:, :, ::2, ::2]
    b = x[:, :, 1::2, ::2]
    c = x[:, :, ::2, 1::2]
    d = x[:, :, 1::2, 1::2]
    sd = jnp.concatenate([a, b, c, d], axis=1)                # (B, 4*C1, H2, W2)
    y = jnp.einsum('ok,bkhw->bohw', w, sd,
                   precision=jax.lax.Precision.HIGHEST)
    scale = gamma / jnp.sqrt(var + eps)
    bias = beta - mean * scale
    y = y * scale[None, :, None, None] + bias[None, :, None, None]
    return y * jax.nn.sigmoid(y)


if __name__ == "__main__":
    key = jax.random.PRNGKey(0)
    B, C1, H, W = 2, 4, 16, 16
    C2 = 32

    k_x, k_w, k_g, k_b, k_m, k_v = jax.random.split(key, 6)
    x = jax.random.normal(k_x, (B, C1, H, W), dtype=jnp.float32)

    # Conv2d(4*C1, C2, k=1, bias=False) weight: (C2, 4*C1, 1, 1) -> squeezed
    fan_in = 4 * C1
    w = jax.random.normal(k_w, (C2, fan_in), dtype=jnp.float32) / jnp.sqrt(fan_in)

    # BatchNorm2d(C2) parameters / running stats (deterministic, non-trivial)
    gamma = 1.0 + 0.1 * jax.random.normal(k_g, (C2,), dtype=jnp.float32)
    beta = 0.1 * jax.random.normal(k_b, (C2,), dtype=jnp.float32)
    run_mean = 0.05 * jax.random.normal(k_m, (C2,), dtype=jnp.float32)
    run_var = 1.0 + 0.1 * jax.random.uniform(k_v, (C2,), dtype=jnp.float32)

    ref = _reference(x, w, gamma, beta, run_mean, run_var)

    # Fast path (bf16 streaming, bf16 output) — the production configuration.
    y = jax.jit(focus_forward)(x, w, gamma, beta, run_mean, run_var)
    jax.block_until_ready(y)
    assert y.shape == (B, C2, H // 2, W // 2), y.shape
    assert y.dtype == jnp.bfloat16, y.dtype
    err_bf16 = float(jnp.max(jnp.abs(y.astype(jnp.float32) - ref)))
    assert bool(jnp.all(jnp.isfinite(y)))
    assert err_bf16 < 0.25, f"bf16 path max abs err {err_bf16}"

    # f32 parity path checked tightly against the pure-JAX reference.
    y32 = jax.jit(functools.partial(focus_forward,
                                    compute_dtype=jnp.float32,
                                    out_dtype=jnp.float32))(
        x, w, gamma, beta, run_mean, run_var)
    jax.block_until_ready(y32)
    err = float(jnp.max(jnp.abs(y32 - ref)))
    assert err < 5e-3, f"f32 path max abs err {err}"

    print("KERNEL_OK")
</pallas_src>

<mosaic_0001>
module attributes {stable_mosaic.version = 11 : i64} {
  func.func @_focus_kernel(%arg0: i32, %arg1: i32, %arg2: memref<1x16x128xbf16, #tpu.memory_space<vmem>>, %arg3: memref<32x16xbf16, #tpu.memory_space<vmem>>, %arg4: memref<32x1xf32, #tpu.memory_space<vmem>>, %arg5: memref<1x32x128xbf16, #tpu.memory_space<vmem>>) attributes {dimension_semantics = [#tpu.dimension_semantics<parallel>, #tpu.dimension_semantics<parallel>], iteration_bounds = array<i64: 2, 1>, scalar_prefetch = 0 : i64, scratch_operands = 0 : i64, tpu.core_type = #tpu.core_type<tc>, window_params = [{transform_indices = @transform_0, window_bounds = array<i64: 1, 16, 128>}, {pipeline_mode = #tpu.pipeline_mode<synchronous>, transform_indices = @transform_1, window_bounds = array<i64: 32, 16>}, {pipeline_mode = #tpu.pipeline_mode<synchronous>, transform_indices = @transform_2, window_bounds = array<i64: 32, 1>}, {transform_indices = @transform_3, window_bounds = array<i64: 1, 32, 128>}]} {
    %c0 = arith.constant 0 : index
    %c0_0 = arith.constant 0 : index
    %0 = vector.load %arg3[%c0, %c0_0] : memref<32x16xbf16, #tpu.memory_space<vmem>>, vector<32x16xbf16>
    %c0_1 = arith.constant 0 : index
    %c0_2 = arith.constant 0 : index
    %c0_3 = arith.constant 0 : index
    %1 = vector.load %arg2[%c0_1, %c0_2, %c0_3] : memref<1x16x128xbf16, #tpu.memory_space<vmem>>, vector<1x16x128xbf16>
    %2 = vector.shape_cast %1 : vector<1x16x128xbf16> to vector<16x128xbf16>
    %cst = arith.constant dense<0.000000e+00> : vector<32x128xf32>
    %3 = tpu.matmul %0, %2, %cst {dimension_numbers = #tpu.dot_dimension_numbers<[1], [0], [0], [1], [0, 0, 1, 1], [], []>} : vector<32x16xbf16>, vector<16x128xbf16>, vector<32x128xf32> -> vector<32x128xf32>
    %c0_4 = arith.constant 0 : index
    %c0_5 = arith.constant 0 : index
    %4 = vector.load %arg4[%c0_4, %c0_5] : memref<32x1xf32, #tpu.memory_space<vmem>>, vector<32x1xf32>
    %5 = vector.broadcast %4 : vector<32x1xf32> to vector<32x128xf32>
    %6 = arith.addf %3, %5 : vector<32x128xf32>
    %cst_6 = arith.constant 5.000000e-01 : f32
    %7 = vector.broadcast %cst_6 : f32 to vector<32x128xf32>
    %8 = arith.mulf %7, %6 : vector<32x128xf32>
    %9 = math.tanh %8 : vector<32x128xf32>
    %cst_7 = arith.constant 5.000000e-01 : f32
    %10 = vector.broadcast %cst_7 : f32 to vector<32x128xf32>
    %11 = arith.mulf %10, %9 : vector<32x128xf32>
    %cst_8 = arith.constant 5.000000e-01 : f32
    %12 = vector.broadcast %cst_8 : f32 to vector<32x128xf32>
    %13 = arith.addf %11, %12 : vector<32x128xf32>
    %14 = arith.mulf %6, %13 : vector<32x128xf32>
    %15 = arith.truncf %14 : vector<32x128xf32> to vector<32x128xbf16>
    %c0_9 = arith.constant 0 : index
    %c0_10 = arith.constant 0 : index
    %c0_11 = arith.constant 0 : index
    %16 = vector.load %arg5[%c0_9, %c0_10, %c0_11] : memref<1x32x128xbf16, #tpu.memory_space<vmem>>, vector<1x32x128xbf16>
    %17 = vector.shape_cast %16 : vector<1x32x128xbf16> to vector<32x128xbf16>
    %18 = vector.shape_cast %15 : vector<32x128xbf16> to vector<1x32x128xbf16>
    tpu.vector_store %arg5[%c0_9, %c0_10, %c0_11], %18 {strides = array<i32>} : memref<1x32x128xbf16, #tpu.memory_space<vmem>>, vector<1x32x128xbf16>,
    return
  }
  func.func @transform_0(%arg0: i32, %arg1: i32) -> (i32, i32, i32) {
    %c0_i32 = arith.constant 0 : i32
    %c0_i32_0 = arith.constant 0 : i32
    return %arg0, %c0_i32, %arg1 : i32, i32, i32
  }
  func.func @transform_1(%arg0: i32, %arg1: i32) -> (i32, i32) {
    %c0_i32 = arith.constant 0 : i32
    %c0_i32_0 = arith.constant 0 : i32
    %c0_i32_1 = arith.constant 0 : i32
    return %c0_i32, %c0_i32_0 : i32, i32
  }
  func.func @transform_2(%arg0: i32, %arg1: i32) -> (i32, i32) {
    %c0_i32 = arith.constant 0 : i32
    %c0_i32_0 = arith.constant 0 : i32
    %c0_i32_1 = arith.constant 0 : i32
    return %c0_i32, %c0_i32_0 : i32, i32
  }
  func.func @transform_3(%arg0: i32, %arg1: i32) -> (i32, i32, i32) {
    %c0_i32 = arith.constant 0 : i32
    %c0_i32_0 = arith.constant 0 : i32
    return %arg0, %c0_i32, %arg1 : i32, i32, i32
  }
}

</mosaic_0001>

<bundles_post_ra>
// kernel: focus_forward.1
= control target key start
LH: loop header
LB: loop body
LE: loop exit
PB: predicated region body
PF: predicated region fallthrough
CT: control target
= control target key end

     0   :  { %s557_s12 = smov 0   ;;  %s559_s13 = smov 0   ;;  %s614_s0 = inlined_call_operand.vmem [shape: bf16[2,16,128], index: 0, kind: input, shape index: {}]   ;;  %s615_s1 = inlined_call_operand.vmem [shape: bf16[32,16], index: 1, kind: input, shape index: {}]   ;;  %s616_s2 = inlined_call_operand.vmem [shape: f32[32,1], index: 2, kind: input, shape index: {}]   ;;  %s617_s3 = inlined_call_operand.vmem [shape: bf16[2,32,128], index: 3, kind: output, shape index: {}]  }
   0x1   :  { %s561_s14 = smov 0  }
   0x2 LB: > { %s25_s15 = sadd.s32 1, %s530_s13  ;;  %p432_p0 = scmp.ge.s32.totalorder %s534_s14, 1  ;;  %s534_s14 = sphi %s561_s14, %s13_s14   ;;  %s530_s13 = sphi %s559_s13, %s619_s13   ;;  %s526_s12 = sphi %s557_s12, %s618_s12  }
   0x3   : > { %p27_p1 = scmp.ge.s32.totalorder %s25_s15, 2  ;;  %p156_p2 = scmp.lt.s32.totalorder %s534_s14, 3 }
   0x5   : > { %s621_s15 = smov (%p27_p1, %s25_s15), 0  ;;  %p157_p3 = pnand %p432_p0, %p156_p2 }
   0x6   : > { %p186_p4 = scmp.lt.s32.totalorder (!%p157_p3), %s526_s12, 1  ;;  %v502_v0 = vld [vmem:[%s615_s1] sm:$0xff] (!%p157_p3)   ;;  %vm249_vm0 = vcmask (!%p157_p3), 130048   ;;  %v211_v1 = vld [vmem:[%s616_s2 + $0x10] sm:$0xff] (!%p157_p3)  ;;  %v536_v3 = vmov (!%p157_p3), 0   ;;  %v212_v4 = vld [vmem:[%s616_s2 + $0x18] sm:$0xff] (!%p157_p3) }
   0x7   : > { %160 = sbr.rel (%p157_p3) target bundleno = 261 (0x105), region = 32  ;;  %470 = vmatprep.mubr.msk.bf16.mxu0 (!%p157_p3), %vm249_vm0, %v502_v0  ;;  %v209_v2 = vld [vmem:[%s616_s2] sm:$0xff] (!%p157_p3)  ;;  %500 = vset.pattern.permute.xlu1 (!%p157_p3), %v536_v3  ;;  %v210_v5 = vld [vmem:[%s616_s2 + $0x8] sm:$0xff] (!%p157_p3) }
   0x8   : > { %499 = vset.pattern.permute.xlu0 (!%p157_p3), %v536_v3  ;;  %225 = vperm.xlu1 (!%p157_p3), %500, %v211_v1   ;;  %v503_v7 = vld [vmem:[%s615_s1 + $0x8] sm:$0xff] (!%p157_p3)  }
   0x9   : > { %215 = vperm.xlu0 (!%p157_p3), %499, %v209_v2  }
   0xc   : > { %230 = vperm.xlu1 (!%p157_p3), %500, %v212_v4  }
   0xd   : > { %220 = vperm.xlu0 (!%p157_p3), %499, %v210_v5  }
   0xe   : > { %s623_s12 = smov (!%p186_p4, %s526_s12), 1 }
   0xf   : > { %s448_s22 = sshll.u32 %s623_s12, 3  ;;  %s449_s5 = sshll.u32 %s623_s12, 4 }
  0x10   : > { %s193_s25 = scalar_lea.vmem %s614_s0, %s448_s22  ;;  %s201_s8 = scalar_lea.vmem %s617_s3, %s449_s5 }
  0x11   : > { %v501_v6 = vld [vmem:[%s193_s25] sm:$0xff]  }
  0x12   : > { %468 = vmatprep.subr.bf16.mxu0 %v501_v6 }
  0x13   : > { %469 = vmatpush3.bf16.msra.mxu0 %v501_v6 }
  0x16   : > { %471 = vmatmul.mubr.msk.bf16.vlgmr.msra.gmra.mrb[0].mxu0 %vm249_vm0, %v503_v7 }
  0x87   : > { %v226_v8 = vpop.permute.xlu1 %225 }
  0x88   : > { %v216_v9 = vpop.permute.xlu0 %215 }
  0x8b   : > { %v231_v13 = vpop.permute.xlu1 %230 }
  0x8c   : > { %v221_v16 = vpop.permute.xlu0 %220 }
  0xe9   : > { %v472_v10 = vpop.f32.mrb[0].mxu0 }
  0xea   : > { %v299_v11 = vadd.f32 %v472_v10, %v226_v8  ;;  %v290_v12 = vpop.f32.mrb[1].mxu0 }
  0xeb   : > { %v291_v14 = vadd.f32 %v290_v12, %v216_v9  ;;  %v473_v15 = vpop.f32.mrb[2].mxu0 }
  0xec   : > { %v307_v17 = vmul.f32 0.5, %v299_v11  ;;  %v302_v18 = vadd.f32 %v473_v15, %v231_v13  ;;  %v293_v19 = vpop.f32.mrb[3].mxu0 }
  0xed   : > { %v305_v20 = vmul.f32 0.5, %v291_v14  ;;  %v294_v21 = vadd.f32 %v293_v19, %v221_v16 }
  0xee   : > { %504 = vtanh.f32 %v307_v17  ;;  %v308_v22 = vmul.f32 0.5, %v302_v18 }
  0xef   : > { %506 = vtanh.f32 %v305_v20  ;;  %v306_v23 = vmul.f32 0.5, %v294_v21 }
  0xf0   : > { %508 = vtanh.f32 %v308_v22 }
  0xf1   : > { %510 = vtanh.f32 %v306_v23 }
  0xf8   : > { %v505_v24 = vpop.eup %504 }
  0xf9   : > { %v507_v25 = vpop.eup %506  ;;  %v315_v26 = vmul.f32 0.5, %v505_v24 }
  0xfa   : > { %v509_v27 = vpop.eup %508  ;;  %v313_v28 = vmul.f32 0.5, %v507_v25 }
  0xfb   : > { %v511_v29 = vpop.eup %510  ;;  %v319_v30 = vadd.f32 0.5, %v315_v26  ;;  %v316_v31 = vmul.f32 0.5, %v509_v27 }
  0xfc   : > { %v317_v32 = vadd.f32 0.5, %v313_v28  ;;  %v314_v33 = vmul.f32 0.5, %v511_v29 }
  0xfd   : > { %v320_v34 = vadd.f32 0.5, %v316_v31  ;;  %v323_v36 = vmul.f32 %v319_v30, %v299_v11 }
  0xfe   : > { %v318_v35 = vadd.f32 0.5, %v314_v33  ;;  %v321_v38 = vmul.f32 %v317_v32, %v291_v14 }
  0xff   : > { %v324_v37 = vmul.f32 %v320_v34, %v302_v18 }
 0x100   : > { %v322_v39 = vmul.f32 %v318_v35, %v294_v21 }
 0x101   : > { %v462_v40 = vpack.c.bf16 %v324_v37, %v323_v36 }
 0x102   : > { %v457_v41 = vpack.c.bf16 %v322_v39, %v321_v38 }
 0x103   : > { %464 = vst [vmem:[%s201_s8 + $0x8] sm:$0xff] %v462_v40  }
 0x104   : > { %458 = vst [vmem:[%s201_s8] sm:$0xff] %v457_v41  }
 0x105 PF: > { %s13_s14 = sadd.s32 1, %s534_s14   ;;  %s618_s12 = smov %s530_s13 }
 0x106   : > { %p10_p5 = scmp.ge.s32.totalorder %s13_s14, 4   ;;  %s619_s13 = smov %s621_s15 }
 0x108   :  { %12 = sbr.rel (!%p10_p5) target bundleno = 2 (0x2), region = 62 }

</bundles_post_ra>
